<compile_context>
chip_gen: v7x
topology: tpu7x:2x2x1
jax: 0.10.0
libtpu: 0.0.40
codegen_flags: <defaults>
</compile_context>

<pallas_src>
import functools
import math

import jax
import jax.numpy as jnp
from jax import lax
from jax.experimental import pallas as pl
from jax.experimental.pallas import tpu as pltpu

# ---------------- small synthetic BERT config ----------------
VOCAB = 64
TYPE_VOCAB = 2
MAX_POS = 32
HIDDEN = 32
N_HEADS = 2
HEAD_DIM = HIDDEN // N_HEADS
INTERMEDIATE = 4 * HIDDEN
N_LAYERS = 4
N_CLASS = 2
LN_EPS = 1e-12

ACT_DTYPE = jnp.bfloat16        # matmul weights + inter-layer activation slabs
APPROX_SOFTMAX_RECIP = True     # EUP reciprocal; ~1e-3-level deviation vs exact

_VMEM = pl.BlockSpec(memory_space=pltpu.MemorySpace.VMEM)


# ---------------- in-kernel helpers (f32 elementwise) ----------------
def _gelu(x):
    # tanh-approximation GELU (HF "gelu_new"); erf-gelu differs by <1e-3
    c = math.sqrt(2.0 / math.pi)
    return 0.5 * x * (1.0 + jnp.tanh(c * (x + 0.044715 * x * x * x)))


def _layernorm(x, g, b):
    mean = jnp.mean(x, axis=-1, keepdims=True)
    var = jnp.mean(jnp.square(x - mean), axis=-1, keepdims=True)
    inv = lax.rsqrt(var + LN_EPS)
    return (x - mean) * inv * g + b


# ---------------- fused encoder-layer kernel (one batch per grid step) ----------------
def _layer_kernel(h_ref, mask_ref,
                  wqkv_ref, bqkv_ref, wo_ref, bo_ref,
                  ln1_g_ref, ln1_b_ref,
                  w1_ref, b1_ref, w2_ref, b2_ref,
                  ln2_g_ref, ln2_b_ref,
                  o_ref, *, seq, n_heads, head_dim):
    H = n_heads * head_dim
    scale = 1.0 / math.sqrt(head_dim)

    h_in = h_ref[...]                              # (S, H) bf16 — one batch row block
    h_f32 = h_in.astype(jnp.float32)
    mask = mask_ref[...]                           # (1, 1, S) f32 additive, broadcast once

    # ---- fused QKV projection: single bf16 MXU matmul, f32 accumulation ----
    qkv = (jnp.dot(h_in, wqkv_ref[...], preferred_element_type=jnp.float32)
           + bqkv_ref[...])                        # (S, 3H) f32

    # ---- lane-aligned Q/K/V split + batched (heads-leading) attention ----
    def split_heads(x):                            # (S, H) -> (heads, S, head_dim)
        return jnp.swapaxes(x.reshape(seq, n_heads, head_dim), 0, 1)

    q = split_heads(qkv[:, 0:H]).astype(ACT_DTYPE)
    k = split_heads(qkv[:, H:2 * H]).astype(ACT_DTYPE)
    v = split_heads(qkv[:, 2 * H:3 * H]).astype(ACT_DTYPE)

    s = jnp.einsum('hqd,hkd->hqk', q, k,
                   preferred_element_type=jnp.float32) * scale + mask   # (h, S, S) f32
    s = s - jnp.max(s, axis=-1, keepdims=True)
    p = jnp.exp(s)
    denom = jnp.sum(p, axis=-1, keepdims=True)
    if APPROX_SOFTMAX_RECIP:
        p = p * pl.reciprocal(denom, approx=True)
    else:
        p = p / denom
    ctx = jnp.einsum('hqk,hkd->hqd', p.astype(ACT_DTYPE), v,
                     preferred_element_type=jnp.float32)                # (h, S, d) f32
    ctx = jnp.swapaxes(ctx, 0, 1).reshape(seq, H)                       # heads merged in VMEM

    # ---- output projection + add & LayerNorm ----
    attn = (jnp.dot(ctx.astype(ACT_DTYPE), wo_ref[...],
                    preferred_element_type=jnp.float32) + bo_ref[...])
    h1 = _layernorm(attn + h_f32, ln1_g_ref[...], ln1_b_ref[...])

    # ---- feed-forward (gelu) + add & LayerNorm ----
    inter = _gelu(jnp.dot(h1.astype(ACT_DTYPE), w1_ref[...],
                          preferred_element_type=jnp.float32) + b1_ref[...])
    ffn = (jnp.dot(inter.astype(ACT_DTYPE), w2_ref[...],
                   preferred_element_type=jnp.float32) + b2_ref[...])
    h2 = _layernorm(ffn + h1, ln2_g_ref[...], ln2_b_ref[...])

    o_ref[...] = h2.astype(o_ref.dtype)


def pallas_encoder_layer(h, add_mask3, lp, *, batch, seq):
    """One full BERT encoder layer; h:(B*S, H) bf16, add_mask3:(B, 1, S) f32."""
    M, Hd = h.shape
    kernel = functools.partial(_layer_kernel, seq=seq,
                               n_heads=N_HEADS, head_dim=HEAD_DIM)

    def resident(x):
        # constant index_map -> weight block is DMA'd once, stays VMEM-resident
        return pl.BlockSpec(x.shape, lambda b, _nd=x.ndim: (0,) * _nd)

    args = (h, add_mask3,
            lp["wqkv"], lp["bqkv"].reshape(1, -1),
            lp["wo"], lp["bo"].reshape(1, -1),
            lp["ln1_g"].reshape(1, -1), lp["ln1_b"].reshape(1, -1),
            lp["w1"], lp["b1"].reshape(1, -1),
            lp["w2"], lp["b2"].reshape(1, -1),
            lp["ln2_g"].reshape(1, -1), lp["ln2_b"].reshape(1, -1))

    in_specs = [pl.BlockSpec((seq, Hd), lambda b: (b, 0)),        # activations, per batch
                pl.BlockSpec((1, 1, seq), lambda b: (b, 0, 0))]   # additive mask, per batch
    in_specs += [resident(a) for a in args[2:]]

    flops = (2 * M * (Hd * 3 * Hd + Hd * Hd + 2 * Hd * INTERMEDIATE)
             + 4 * batch * N_HEADS * seq * seq * HEAD_DIM)
    bytes_w = sum(int(a.size) * a.dtype.itemsize for a in args[2:])
    cost = pl.CostEstimate(
        flops=flops,
        transcendentals=batch * N_HEADS * seq * seq + M * INTERMEDIATE,
        bytes_accessed=bytes_w + 2 * M * Hd * h.dtype.itemsize)

    return pl.pallas_call(
        kernel,
        out_shape=jax.ShapeDtypeStruct((M, Hd), h.dtype),
        grid_spec=pltpu.PrefetchScalarGridSpec(
            num_scalar_prefetch=0,
            grid=(batch,),
            in_specs=in_specs,
            out_specs=pl.BlockSpec((seq, Hd), lambda b: (b, 0))),
        compiler_params=pltpu.CompilerParams(
            dimension_semantics=("parallel",)),   # shards over v7x's 2 TCs
        cost_estimate=cost,
    )(*args)


# ---------------- embedding-combine + LayerNorm kernel ----------------
def _emb_ln_kernel(we_ref, te_ref, pe_ref, g_ref, b_ref, o_ref, *, batch, seq):
    we = we_ref[...].astype(jnp.float32).reshape(batch, seq, -1)
    te = te_ref[...].astype(jnp.float32).reshape(batch, seq, -1)
    pe = pe_ref[...].astype(jnp.float32)[None, :, :]
    x = (we + te + pe).reshape(batch * seq, -1)
    o_ref[...] = _layernorm(x, g_ref[...], b_ref[...]).astype(o_ref.dtype)


def pallas_embed_layernorm(word_e, type_e, pos_e, gamma, beta, *, batch, seq):
    M, H = word_e.shape
    kernel = functools.partial(_emb_ln_kernel, batch=batch, seq=seq)
    return pl.pallas_call(
        kernel,
        out_shape=jax.ShapeDtypeStruct((M, H), ACT_DTYPE),
        in_specs=[_VMEM] * 5,
        out_specs=_VMEM,
    )(word_e, type_e, pos_e, gamma.reshape(1, H), beta.reshape(1, H))


# ---------------- fused pooler (tanh) + classifier kernel ----------------
def _pooler_cls_kernel(h_ref, pw_ref, pb_ref, cw_ref, cb_ref, o_ref, *, batch, seq):
    # CLS rows extracted inside the kernel (no strided XLA gather between kernels).
    cls = h_ref[...].astype(jnp.float32).reshape(batch, seq, -1)[:, 0, :]
    pooled = jnp.tanh(jnp.dot(cls, pw_ref[...],
                              preferred_element_type=jnp.float32) + pb_ref[...])
    logits = (jnp.dot(pooled, cw_ref[...], preferred_element_type=jnp.float32)
              + cb_ref[...])
    # TODO(synk): logits last dim (n_class=2) is a masked partial store; pad to
    # 128 lanes if this tiny head ever becomes the bottleneck.
    o_ref[...] = logits.astype(o_ref.dtype)


def pallas_pooler_classifier(h_final, pool_w, pool_b, cls_w, cls_b, *, batch, seq):
    kernel = functools.partial(_pooler_cls_kernel, batch=batch, seq=seq)
    return pl.pallas_call(
        kernel,
        out_shape=jax.ShapeDtypeStruct((batch, cls_w.shape[1]), jnp.float32),
        in_specs=[_VMEM] * 5,
        out_specs=_VMEM,
    )(h_final, pool_w, pool_b.reshape(1, -1), cls_w, cls_b.reshape(1, -1))


# ---------------- small linear kernel (select-path head) ----------------
def _linear_kernel(x_ref, w_ref, b_ref, o_ref):
    x = x_ref[...].astype(jnp.float32)
    o_ref[...] = (jnp.dot(x, w_ref[...], preferred_element_type=jnp.float32)
                  + b_ref[...]).astype(o_ref.dtype)


def pallas_linear(x, w, b):
    M = x.shape[0]
    N = w.shape[1]
    return pl.pallas_call(
        _linear_kernel,
        out_shape=jax.ShapeDtypeStruct((M, N), jnp.float32),
        in_specs=[_VMEM] * 3,
        out_specs=_VMEM,
    )(x, w, b.reshape(1, N))


# ---------------- deterministic parameter init ----------------
def init_params(key, select=False):
    keys = iter(jax.random.split(key, 16 + 16 * N_LAYERS))

    def normal(shape, dtype=jnp.float32):
        return (0.02 * jax.random.normal(next(keys), shape, dtype=jnp.float32)).astype(dtype)

    layers = []
    for _ in range(N_LAYERS):
        layers.append({
            # Q/K/V fused into one (H, 3H) bf16 weight for a single MXU call.
            "wqkv": normal((HIDDEN, 3 * HIDDEN), ACT_DTYPE),
            "bqkv": jnp.zeros((3 * HIDDEN,), jnp.float32),
            "wo": normal((HIDDEN, HIDDEN), ACT_DTYPE),
            "bo": jnp.zeros((HIDDEN,), jnp.float32),
            "ln1_g": jnp.ones((HIDDEN,), jnp.float32),
            "ln1_b": jnp.zeros((HIDDEN,), jnp.float32),
            "w1": normal((HIDDEN, INTERMEDIATE), ACT_DTYPE),
            "b1": jnp.zeros((INTERMEDIATE,), jnp.float32),
            "w2": normal((INTERMEDIATE, HIDDEN), ACT_DTYPE),
            "b2": jnp.zeros((HIDDEN,), jnp.float32),
            "ln2_g": jnp.ones((HIDDEN,), jnp.float32),
            "ln2_b": jnp.zeros((HIDDEN,), jnp.float32),
        })

    p = {
        "word_emb": normal((VOCAB, HIDDEN)),
        "pos_emb": normal((MAX_POS, HIDDEN)),
        "type_emb": normal((TYPE_VOCAB, HIDDEN)),
        "emb_ln_g": jnp.ones((HIDDEN,), jnp.float32),
        "emb_ln_b": jnp.zeros((HIDDEN,), jnp.float32),
        # stacked (leading dim = N_LAYERS) so the layer kernel is traced once under scan
        "layers_stacked": {k: jnp.stack([lp[k] for lp in layers])
                           for k in layers[0]},
        "pool_w": normal((HIDDEN, HIDDEN)),
        "pool_b": jnp.zeros((HIDDEN,), jnp.float32),
        "cls_w": normal((HIDDEN, N_CLASS)),
        "cls_b": jnp.zeros((N_CLASS,), jnp.float32),
    }
    if select:
        p["head_w"] = normal((4 * HIDDEN, N_CLASS))
        p["head_b"] = jnp.zeros((N_CLASS,), jnp.float32)
    return p


# ---------------- forward pass (mirrors BertModel.forward) ----------------
def bert_forward(params, input_ids, attention_mask, segment_ids, select=False):
    B, S = input_ids.shape

    # TODO(synk): embedding gathers stay as plain-JAX glue (no clean Pallas gather here).
    pos = jnp.arange(S, dtype=jnp.int32)
    word_e = jnp.take(params["word_emb"], input_ids.reshape(-1), axis=0)    # (B*S, H)
    type_e = jnp.take(params["type_emb"], segment_ids.reshape(-1), axis=0)  # (B*S, H)
    pos_e = jnp.take(params["pos_emb"], pos, axis=0)                        # (S, H)

    # embedding sum + LayerNorm fused in one kernel -> bf16 activation slab
    h = pallas_embed_layernorm(word_e, type_e, pos_e,
                               params["emb_ln_g"], params["emb_ln_b"],
                               batch=B, seq=S)

    # HF-style additive attention mask, kept f32 even with bf16 activations
    add_mask3 = ((1.0 - attention_mask.astype(jnp.float32)) * -10000.0).reshape(B, 1, S)

    if select:
        # torch.cat(hidden_states[-4:], dim=-1)[:, 0, :] -> Linear(4*H, n_class);
        # only the (B, H) CLS rows are emitted from the scan (not the full slabs).
        def step(carry_h, lp):
            h_new = pallas_encoder_layer(carry_h, add_mask3, lp, batch=B, seq=S)
            return h_new, h_new.reshape(B, S, HIDDEN)[:, 0, :]
        _, cls_per_layer = lax.scan(step, h, params["layers_stacked"])   # (L, B, H)
        pooled = jnp.concatenate(
            [cls_per_layer[i] for i in (-4, -3, -2, -1)], axis=-1)       # (B, 4H)
        logits = pallas_linear(pooled, params["head_w"], params["head_b"])
    else:
        # default path: no per-layer hidden-state stash at all
        def step(carry_h, lp):
            h_new = pallas_encoder_layer(carry_h, add_mask3, lp, batch=B, seq=S)
            return h_new, None
        h_final, _ = lax.scan(step, h, params["layers_stacked"])
        # BERT pooler (tanh) + classifier fused; CLS rows sliced inside the kernel
        logits = pallas_pooler_classifier(h_final, params["pool_w"], params["pool_b"],
                                          params["cls_w"], params["cls_b"],
                                          batch=B, seq=S)
    return logits


# ---------------- demo ----------------
if __name__ == "__main__":
    B, S = 2, 16   # S=16 keeps bf16 activation blocks aligned to the (16,128) bf16 tile
    key = jax.random.PRNGKey(0)
    k_ids, k_seg, k_par = jax.random.split(key, 3)

    input_ids = jax.random.randint(k_ids, (B, S), 0, VOCAB, dtype=jnp.int32)
    segment_ids = jax.random.randint(k_seg, (B, S), 0, TYPE_VOCAB, dtype=jnp.int32)
    attention_mask = jnp.ones((B, S), jnp.int32).at[1, S - 3:].set(0)   # some padding

    params = init_params(k_par, select=True)

    # default path (select=False): logits from pooler + classifier
    logits = bert_forward(params, input_ids, attention_mask, segment_ids, select=False)
    jax.block_until_ready(logits)
    assert logits.shape == (B, N_CLASS)
    assert bool(jnp.all(jnp.isfinite(logits)))

    # select path: concat [CLS] of last 4 hidden states -> head
    logits_sel = bert_forward(params, input_ids, attention_mask, segment_ids, select=True)
    jax.block_until_ready(logits_sel)
    assert logits_sel.shape == (B, N_CLASS)
    assert bool(jnp.all(jnp.isfinite(logits_sel)))

    print("KERNEL_OK")
</pallas_src>

<mosaic_0001>
module attributes {stable_mosaic.version = 11 : i64} {
  func.func @_emb_ln_kernel(%arg0: memref<32x32xf32, #tpu.memory_space<vmem>>, %arg1: memref<32x32xf32, #tpu.memory_space<vmem>>, %arg2: memref<16x32xf32, #tpu.memory_space<vmem>>, %arg3: memref<1x32xf32, #tpu.memory_space<vmem>>, %arg4: memref<1x32xf32, #tpu.memory_space<vmem>>, %arg5: memref<32x32xbf16, #tpu.memory_space<vmem>>) attributes {dimension_semantics = [], scalar_prefetch = 0 : i64, scratch_operands = 0 : i64, tpu.core_type = #tpu.core_type<tc>} {
    %c0 = arith.constant 0 : index
    %c0_0 = arith.constant 0 : index
    %0 = vector.load %arg0[%c0, %c0_0] : memref<32x32xf32, #tpu.memory_space<vmem>>, vector<32x32xf32>
    %1 = vector.shape_cast %0 : vector<32x32xf32> to vector<2x16x32xf32>
    %c0_1 = arith.constant 0 : index
    %c0_2 = arith.constant 0 : index
    %2 = vector.load %arg1[%c0_1, %c0_2] : memref<32x32xf32, #tpu.memory_space<vmem>>, vector<32x32xf32>
    %3 = vector.shape_cast %2 : vector<32x32xf32> to vector<2x16x32xf32>
    %c0_3 = arith.constant 0 : index
    %c0_4 = arith.constant 0 : index
    %4 = vector.load %arg2[%c0_3, %c0_4] : memref<16x32xf32, #tpu.memory_space<vmem>>, vector<16x32xf32>
    %5 = vector.shape_cast %4 : vector<16x32xf32> to vector<1x16x32xf32>
    %6 = arith.addf %1, %3 : vector<2x16x32xf32>
    %7 = vector.broadcast %5 : vector<1x16x32xf32> to vector<2x16x32xf32>
    %8 = arith.addf %6, %7 : vector<2x16x32xf32>
    %9 = vector.shape_cast %8 : vector<2x16x32xf32> to vector<32x32xf32>
    %c0_5 = arith.constant 0 : index
    %c0_6 = arith.constant 0 : index
    %10 = vector.load %arg3[%c0_5, %c0_6] : memref<1x32xf32, #tpu.memory_space<vmem>>, vector<1x32xf32>
    %c0_7 = arith.constant 0 : index
    %c0_8 = arith.constant 0 : index
    %11 = vector.load %arg4[%c0_7, %c0_8] : memref<1x32xf32, #tpu.memory_space<vmem>>, vector<1x32xf32>
    %cst = arith.constant dense<0.000000e+00> : vector<32xf32>
    %12 = vector.multi_reduction <add>, %9, %cst [1] : vector<32x32xf32> to vector<32xf32>
    %13 = vector.shape_cast %12 : vector<32xf32> to vector<32x1xf32>
    %cst_9 = arith.constant 3.200000e+01 : f32
    %14 = vector.broadcast %cst_9 : f32 to vector<32x1xf32>
    %15 = arith.divf %13, %14 : vector<32x1xf32>
    %16 = vector.broadcast %15 : vector<32x1xf32> to vector<32x32xf32>
    %17 = arith.subf %9, %16 : vector<32x32xf32>
    %18 = arith.mulf %17, %17 : vector<32x32xf32>
    %cst_10 = arith.constant dense<0.000000e+00> : vector<32xf32>
    %19 = vector.multi_reduction <add>, %18, %cst_10 [1] : vector<32x32xf32> to vector<32xf32>
    %20 = vector.shape_cast %19 : vector<32xf32> to vector<32x1xf32>
    %cst_11 = arith.constant 3.200000e+01 : f32
    %21 = vector.broadcast %cst_11 : f32 to vector<32x1xf32>
    %22 = arith.divf %20, %21 : vector<32x1xf32>
    %cst_12 = arith.constant 9.99999996E-13 : f32
    %23 = vector.broadcast %cst_12 : f32 to vector<32x1xf32>
    %24 = arith.addf %22, %23 : vector<32x1xf32>
    %25 = math.rsqrt %24 : vector<32x1xf32>
    %26 = vector.broadcast %15 : vector<32x1xf32> to vector<32x32xf32>
    %27 = arith.subf %9, %26 : vector<32x32xf32>
    %28 = vector.broadcast %25 : vector<32x1xf32> to vector<32x32xf32>
    %29 = arith.mulf %27, %28 : vector<32x32xf32>
    %30 = vector.broadcast %10 : vector<1x32xf32> to vector<32x32xf32>
    %31 = arith.mulf %29, %30 : vector<32x32xf32>
    %32 = vector.broadcast %11 : vector<1x32xf32> to vector<32x32xf32>
    %33 = arith.addf %31, %32 : vector<32x32xf32>
    %34 = arith.truncf %33 : vector<32x32xf32> to vector<32x32xbf16>
    %c0_13 = arith.constant 0 : index
    %c0_14 = arith.constant 0 : index
    %35 = vector.load %arg5[%c0_13, %c0_14] : memref<32x32xbf16, #tpu.memory_space<vmem>>, vector<32x32xbf16>
    tpu.vector_store %arg5[%c0_13, %c0_14], %34 {strides = array<i32>} : memref<32x32xbf16, #tpu.memory_space<vmem>>, vector<32x32xbf16>,
    return
  }
}

</mosaic_0001>

<bundles_post_ra>
// kernel: tpu_custom_call.1
= control target key start
LH: loop header
LB: loop body
LE: loop exit
PB: predicated region body
PF: predicated region fallthrough
CT: control target
= control target key end

     0   :  { %10 = vsyncpa [#allocation3], 0  ;;  %s435_s0 = inlined_call_operand.hbm [shape: f32[32,32], index: 0, kind: input, shape index: {}]   ;;  %s436_s1 = inlined_call_operand.hbm [shape: f32[32,32], index: 1, kind: input, shape index: {}]   ;;  %s437_s2 = inlined_call_operand.hbm [shape: f32[16,32], index: 2, kind: input, shape index: {}]   ;;  %s438_s3 = inlined_call_operand.vmem [shape: f32[1,32], index: 3, kind: input, shape index: {}]   ;;  %s439_s4 = inlined_call_operand.vmem [shape: f32[1,32], index: 4, kind: input, shape index: {}]   ;;  %s440_s5 = inlined_call_operand.hbm [shape: bf16[32,32], index: 5, kind: output, shape index: {}]  }
   0x1   :  { %11 = vsyncpa [#allocation6], 0 }
   0x2   :  { %12 = vsyncpa [#allocation4], 0  ;;  %s315_s18 = smov [#allocation5]   ;;  %s316_s20 = smov [#allocation2]  }
   0x3   :  { %s30_s19 = sshll.u32 %s315_s18, 4  ;;  %s18_s21 = sshll.u32 %s316_s20, 4  ;;  %s31_s19 = int_to_ptr.vmem [resolvable:$true] %s30_s19  ;;  %s353_s21 = int_to_ptr.vmem [resolvable:$true] %s18_s21 }
   0x4   :  { %s221_s24 = scalar_lea.hbm %s436_s1, 512 }
   0x5   :  { %p222_p0 = scmp.ne.s32.totalorder %s436_s1, %s221_s24  ;;  %p225_p1 = scmp.lt.u32.totalorder %s221_s24, %s436_s1 }
   0x7   :  { %p227_p2 = pnand %p225_p1, %p222_p0 }
   0x9   :  { %230 = shalt.err (!%p227_p2)
}
   0xa   :  { %s231_s29 = scalar_lea.vmem %s31_s19, 512  ;;  %p236_p4 = scmp.lt.s32.totalorder %s31_s19, %s31_s19 }
   0xb   :  { %p232_p3 = scmp.ne.s32.totalorder %s31_s19, %s231_s29  ;;  %p237_p5 = scmp.lt.s32.totalorder %s231_s29, %s231_s29 }
   0xd   :  { %p238_p6 = por %p237_p5, %p236_p4 }
   0xf   :  { %p239_p7 = pnand %p238_p6, %p232_p3 }
  0x11   :  { %242 = shalt.err (!%p239_p7)
}
  0x12   :  { %s317_s30 = smov 128   ;;  %s318_s6 = smov 8  }
  0x13   :  { %36 = dma.hbm_to_vmem [thread:$0]  %s436_s1, 512, %s31_s19, [#allocation6], %s317_s30, %s317_s30, %s318_s6  }
  0x14   :  { %s243_s11 = scalar_lea.hbm %s435_s0, 512 }
  0x15   :  { %p244_p8 = scmp.ne.s32.totalorder %s435_s0, %s243_s11  ;;  %p247_p9 = scmp.lt.u32.totalorder %s243_s11, %s435_s0 }
  0x17   :  { %p249_p10 = pnand %p247_p9, %p244_p8 }
  0x19   :  { %252 = shalt.err (!%p249_p10)
}
  0x1a   :  { %s253_s16 = scalar_lea.vmem %s353_s21, 512  ;;  %p258_p12 = scmp.lt.s32.totalorder %s353_s21, %s353_s21 }
  0x1b   :  { %p254_p11 = scmp.ne.s32.totalorder %s353_s21, %s253_s16  ;;  %p259_p13 = scmp.lt.s32.totalorder %s253_s16, %s253_s16 }
  0x1d   :  { %p260_p0 = por %p259_p13, %p258_p12 }
  0x1f   :  { %p261_p1 = pnand %p260_p0, %p254_p11 }
  0x21   :  { %264 = shalt.err (!%p261_p1)
}
  0x22   :  { %24 = dma.hbm_to_vmem [thread:$0]  %s435_s0, 512, %s353_s21, [#allocation3], %s317_s30, %s317_s30, %s318_s6  }
  0x23   :  { %s319_s18 = smov [#allocation7]   ;;  %s265_s23 = scalar_lea.hbm %s437_s2, 256 }
  0x24   :  { %s42_s19 = sshll.u32 %s319_s18, 4  ;;  %p266_p2 = scmp.ne.s32.totalorder %s437_s2, %s265_s23  ;;  %s43_s19 = int_to_ptr.vmem [resolvable:$true] %s42_s19 }
  0x25   :  { %p269_p3 = scmp.lt.u32.totalorder %s265_s23, %s437_s2 }
  0x27   :  { %p271_p4 = pnand %p269_p3, %p266_p2 }
  0x29   :  { %274 = shalt.err (!%p271_p4)
}
  0x2a   :  { %s275_s28 = scalar_lea.vmem %s43_s19, 256  ;;  %p280_p6 = scmp.lt.s32.totalorder %s43_s19, %s43_s19 }
  0x2b   :  { %p276_p5 = scmp.ne.s32.totalorder %s43_s19, %s275_s28  ;;  %p281_p7 = scmp.lt.s32.totalorder %s275_s28, %s275_s28 }
  0x2d   :  { %p282_p8 = por %p281_p7, %p280_p6 }
  0x2f   :  { %p283_p9 = pnand %p282_p8, %p276_p5 }
  0x31   :  { %286 = shalt.err (!%p283_p9)
}
  0x32   :  { %48 = dma.hbm_to_vmem [thread:$0]  %s437_s2, 256, %s43_s19, [#allocation6], %s317_s30, %s317_s30, %s318_s6  }
  0x33   :  { %309 = dma.done.wait [#allocation3], 512  }
  0x34   :  { %310 = vsyncadd [#allocation3], 4294966784 }
  0x35   :  { %311 = dma.done.wait [#allocation6], 768  }
  0x36   :  { %312 = vsyncadd [#allocation6], 4294966528  ;;  %v62_v0 = vld [vmem:[#allocation2] sm:$0xff]  ;;  %v64_v4 = vld [vmem:[#allocation2 + $0x10] sm:$0xff]  ;;  %vm82_vm0 = vcmask 261120   ;;  %vm172_vm1 = vcmask 257024  }
  0x37   :  { %v66_v1 = vld [vmem:[#allocation5] sm:$0xff]  ;;  %v68_v5 = vld [vmem:[#allocation5 + $0x10] sm:$0xff]  ;;  %v63_v6 = vld [vmem:[#allocation2 + $0x8] sm:$0xff] }
  0x38   :  { %v70_v2 = vld [vmem:[#allocation7] sm:$0xff]  ;;  %v72_v3 = vadd.f32 %v66_v1, %v62_v0  ;;  %v74_v7 = vadd.f32 %v68_v5, %v64_v4  ;;  %v67_v8 = vld [vmem:[#allocation5 + $0x8] sm:$0xff]  ;;  %v65_v10 = vld [vmem:[#allocation2 + $0x18] sm:$0xff] }
  0x39   :  { %v71_v9 = vld [vmem:[#allocation7 + $0x8] sm:$0xff]  ;;  %v73_v12 = vadd.f32 %v67_v8, %v63_v6  ;;  %v69_v13 = vld [vmem:[#allocation5 + $0x18] sm:$0xff]  ;;  %v195_v55 = vld [vmem:[%s438_s3] ss:$0 sm:$0xff]  ;;  %s320_s3 = smov [#allocation8]  }
  0x3a   :  { %v76_v11 = vadd.f32 %v72_v3, %v70_v2  ;;  %v78_v14 = vadd.f32 %v74_v7, %v70_v2  ;;  %v75_v15 = vadd.f32 %v69_v13, %v65_v10  ;;  %v196_v57 = vld [vmem:[%s439_s4] ss:$0 sm:$0xff]  ;;  %s182_s4 = sshll.u32 %s320_s3, 4  ;;  %s183_s4 = int_to_ptr.vmem [resolvable:$true] %s182_s4 }
  0x3b   :  { %v77_v17 = vadd.f32 %v73_v12, %v71_v9  ;;  %s287_s7 = scalar_lea.vmem %s183_s4, 256  ;;  %p292_p11 = scmp.lt.s32.totalorder %s183_s4, %s183_s4 }
  0x3c   :  { %v83_v16 = vsel %vm82_vm0, %v76_v11, 0.0  ;;  %v89_v18 = vsel %vm82_vm0, %v78_v14, 0.0  ;;  %v79_v19 = vadd.f32 %v75_v15, %v71_v9  ;;  %p288_p10 = scmp.ne.s32.totalorder %s183_s4, %s287_s7  ;;  %p293_p12 = scmp.lt.s32.totalorder %s287_s7, %s287_s7 }
  0x3d   :  { %84 = vadd.xlane.f32.xlu0 %v83_v16  ;;  %90 = vadd.xlane.f32.xlu1 %v89_v18  ;;  %v86_v20 = vsel %vm82_vm0, %v77_v17, 0.0 }
  0x3e   :  { %v92_v21 = vsel %vm82_vm0, %v79_v19, 0.0  ;;  %p294_p13 = por %p293_p12, %p292_p11 }
  0x40   :  { %p295_p0 = pnand %p294_p13, %p288_p10 }
  0x41   :  { %87 = vadd.xlane.f32.xlu0 %v86_v20  ;;  %93 = vadd.xlane.f32.xlu1 %v92_v21 }
  0xca   :  { %v85_v22 = vpop.xlane.xlu0 %84  ;;  %v91_v24 = vpop.xlane.xlu1 %90 }
  0xcb   :  { %v96_v23 = vmul.f32 0.03125, %v85_v22  ;;  %v98_v25 = vmul.f32 0.03125, %v91_v24 }
  0xcd   :  { %v100_v26 = vsub.f32 %v76_v11, %v96_v23  ;;  %v102_v27 = vsub.f32 %v78_v14, %v98_v25 }
  0xce   :  { %v88_v28 = vpop.xlane.xlu0 %87  ;;  %v94_v30 = vpop.xlane.xlu1 %93 }
  0xcf   :  { %v97_v29 = vmul.f32 0.03125, %v88_v28  ;;  %v104_v31 = vmul.f32 %v100_v26, %v100_v26  ;;  %v99_v32 = vmul.f32 0.03125, %v94_v30  ;;  %v106_v33 = vmul.f32 %v102_v27, %v102_v27 }
  0xd1   :  { %v101_v34 = vsub.f32 %v77_v17, %v97_v29  ;;  %v108_v35 = vsel %vm82_vm0, %v104_v31, 0.0  ;;  %v103_v36 = vsub.f32 %v79_v19, %v99_v32  ;;  %v114_v37 = vsel %vm82_vm0, %v106_v33, 0.0 }
  0xd2   :  { %109 = vadd.xlane.f32.xlu0 %v108_v35 }
  0xd3   :  { %v105_v38 = vmul.f32 %v101_v34, %v101_v34  ;;  %v107_v39 = vmul.f32 %v103_v36, %v103_v36 }
  0xd5   :  { %v111_v40 = vsel %vm82_vm0, %v105_v38, 0.0  ;;  %v117_v41 = vsel %vm82_vm0, %v107_v39, 0.0 }
  0xd6   :  { %115 = vadd.xlane.f32.xlu0 %v114_v37  ;;  %112 = vadd.xlane.f32.xlu1 %v111_v40 }
  0xda   :  { %118 = vadd.xlane.f32.xlu1 %v117_v41 }
 0x15f   :  { %v110_v42 = vpop.xlane.xlu0 %109 }
 0x160   :  { %v120_v43 = vmul.f32 0.03125, %v110_v42 }
 0x162   :  { %v124_v44 = vadd.f32 1e-12, %v120_v43 }
 0x163   :  { %v113_v45 = vpop.xlane.xlu1 %112  ;;  %v116_v46 = vpop.xlane.xlu0 %115 }
 0x164   :  { %213 = vrsqrt.f32 %v124_v44  ;;  %v121_v47 = vmul.f32 0.03125, %v113_v45  ;;  %v122_v48 = vmul.f32 0.03125, %v116_v46 }
 0x166   :  { %v125_v49 = vadd.f32 1e-12, %v121_v47  ;;  %v126_v50 = vadd.f32 1e-12, %v122_v48 }
 0x167   :  { %v119_v51 = vpop.xlane.xlu1 %118 }
 0x168   :  { %215 = vrsqrt.f32 %v125_v49  ;;  %v123_v52 = vmul.f32 0.03125, %v119_v51 }
 0x169   :  { %217 = vrsqrt.f32 %v126_v50 }
 0x16a   :  { %v127_v53 = vadd.f32 1e-12, %v123_v52 }
 0x16c   :  { %219 = vrsqrt.f32 %v127_v53 }
 0x16e   :  { %v214_v54 = vpop.eup %213 }
 0x16f   :  { %v132_v56 = vmul.f32 %v214_v54, %v100_v26 }
 0x171   :  { %v142_v58 = vmul.f32 %v195_v55, %v132_v56 }
 0x172   :  { %v216_v59 = vpop.eup %215 }
 0x173   :  { %v218_v60 = vpop.eup %217  ;;  %v152_v61 = vadd.f32 %v196_v57, %v142_v58  ;;  %v133_v62 = vmul.f32 %v216_v59, %v101_v34 }
 0x174   :  { %v134_v63 = vmul.f32 %v218_v60, %v102_v27 }
 0x175   :  { %v201_v0 = vpack.c.bf16 %v152_v61, %v152_v61  ;;  %v143_v1 = vmul.f32 %v195_v55, %v133_v62 }
 0x176   :  { %v220_v2 = vpop.eup %219  ;;  %v144_v3 = vmul.f32 %v195_v55, %v134_v63 }
 0x177   :  { %v153_v4 = vadd.f32 %v196_v57, %v143_v1  ;;  %v135_v5 = vmul.f32 %v220_v2, %v103_v36  ;;  %173 = vst.msk [vmem:[#allocation8] sm:$0xf] %vm172_vm1, %v201_v0 }
 0x178   :  { %v154_v6 = vadd.f32 %v196_v57, %v144_v3 }
 0x179   :  { %v202_v7 = vpack.c.bf16 %v153_v4, %v153_v4  ;;  %v145_v8 = vmul.f32 %v195_v55, %v135_v5 }
 0x17a   :  { %v203_v9 = vpack.c.bf16 %v154_v6, %v154_v6 }
 0x17b   :  { %v155_v10 = vadd.f32 %v196_v57, %v145_v8  ;;  %174 = vst.msk [vmem:[#allocation8 + $0x4] sm:$0xf] %vm172_vm1, %v202_v7 }
 0x17c   :  { %175 = vst.msk [vmem:[#allocation8 + $0x8] sm:$0xf] %vm172_vm1, %v203_v9 }
 0x17d   :  { %v204_v11 = vpack.c.bf16 %v155_v10, %v155_v10 }
 0x17f   :  { %176 = vst.msk [vmem:[#allocation8 + $0xc] sm:$0xf] %vm172_vm1, %v204_v11 }
 0x180   :  { %298 = shalt.err (!%p295_p0)
}
 0x181   :  { %s299_s10 = scalar_lea.hbm %s440_s5, 256 }
 0x182   :  { %p300_p1 = scmp.ne.s32.totalorder %s440_s5, %s299_s10  ;;  %p303_p2 = scmp.lt.u32.totalorder %s299_s10, %s440_s5 }
 0x184   :  { %p305_p3 = pnand %p303_p2, %p300_p1 }
 0x186   :  { %308 = shalt.err (!%p305_p3)
}
 0x187   :  { %s321_s15 = smov 64   ;;  %s322_s16 = smov 4  }
 0x188   :  { %188 = dma.vmem_to_hbm [thread:$0]  %s183_s4, 256, %s440_s5, [#allocation4], %s321_s15, %s321_s15, %s322_s16  }
 0x189   :  { %313 = dma.done.wait [#allocation4], 256  }
 0x18a   :  { %314 = vsyncadd [#allocation4], 4294967040 }
 0x18b   :  { %192 = vsyncpa [#allocation3], 1 }
 0x18c   :  { %193 = vsyncpa [#allocation6], 1 }
 0x18d   :  { %194 = vsyncpa [#allocation4], 1 }

</bundles_post_ra>
